<compile_context>
chip_gen: v5e
topology: v5e:2x2
jax: 0.10.0
libtpu: 0.0.40
codegen_flags: <defaults>
</compile_context>

<pallas_src>
import functools

import jax
import jax.numpy as jnp
import numpy as np
from jax import lax
from jax.experimental import pallas as pl
from jax.experimental.pallas import tpu as pltpu

KH = KW = 7
PAD = (KH - 1) // 2  # 3
BN_EPS = 1e-5


# ---------------------------------------------------------------------------
# Pass 1: channel pooling (max & mean over C), streamed over (N, C) blocks.
# ---------------------------------------------------------------------------
def pool_kernel(x_ref, pmax_ref, pmean_ref, rmax_ref, rsum_ref, *, inv_c):
    # x_ref:              (nblk, cblk, HW)  native dtype, lane-dense minor dim
    # pmax_ref/pmean_ref: (nblk, 1, HW)     f32 outputs, resident across the C axis
    # rmax_ref/rsum_ref:  (nblk, 1, HW)     f32 VMEM scratch (running accumulators)
    c = pl.program_id(1)
    xb = x_ref[...].astype(jnp.float32)
    bmax = jnp.max(xb, axis=1, keepdims=True)            # (nblk, 1, HW)
    bsum = jnp.sum(xb, axis=1, keepdims=True)            # (nblk, 1, HW)

    @pl.when(c == 0)
    def _():
        rmax_ref[...] = bmax
        rsum_ref[...] = bsum

    @pl.when(c > 0)
    def _():
        rmax_ref[...] = jnp.maximum(rmax_ref[...], bmax)
        rsum_ref[...] = rsum_ref[...] + bsum

    @pl.when(c == pl.num_programs(1) - 1)
    def _():
        pmax_ref[...] = rmax_ref[...]
        pmean_ref[...] = rsum_ref[...] * inv_c            # running sum -> mean


# ---------------------------------------------------------------------------
# Pass 2: 7x7 conv (2->1, padding=3) + BatchNorm2d(1) batch stats + sigmoid.
# Operates only on the tiny pooled maps, so it is fully VMEM resident.
# ---------------------------------------------------------------------------
def conv_bn_sigmoid_kernel(pmax_ref, pmean_ref, p_ref, scale_ref, pad_ref):
    # pmax_ref/pmean_ref: (N, H, W) f32 pooled maps
    # p_ref:              (101,) f32 SMEM = [98 conv taps, conv bias, gamma, beta]
    # scale_ref:          (N, H, W) scale dtype (f32, or bf16 for bf16 inputs)
    # pad_ref:            (2, N, H+6, W+6) f32 scratch (zero-padded pooled maps)
    N, H, W = pmax_ref.shape
    Wp = W + 2 * PAD

    # Zero only the halo (top/bottom row bands + left/right column bands), then
    # write the interiors — avoids a full-scratch store + interior re-store.
    for ch, src in ((0, pmax_ref), (1, pmean_ref)):
        pad_ref[ch, :, :PAD, :] = jnp.zeros((N, PAD, Wp), jnp.float32)
        pad_ref[ch, :, PAD + H:, :] = jnp.zeros((N, PAD, Wp), jnp.float32)
        pad_ref[ch, :, PAD:PAD + H, :PAD] = jnp.zeros((N, H, PAD), jnp.float32)
        pad_ref[ch, :, PAD:PAD + H, PAD + W:] = jnp.zeros((N, H, PAD), jnp.float32)
        pad_ref[ch, :, PAD:PAD + H, PAD:PAD + W] = src[...]

    bias = p_ref[2 * KH * KW]
    gamma = p_ref[2 * KH * KW + 1]
    beta = p_ref[2 * KH * KW + 2]

    # 7x7 conv: 14 row-slab VMEM loads (one per (channel, ki)); the 7 kj shifts
    # are in-register lane slices of each slab.  Two partial accumulators give
    # enough ILP for the VALU slots while halving live f32 temporaries.
    # TODO(synk): for large N*H*W, grid this pass over N/H row-slabs (BN stats
    # accumulated via scratch + finalized in pass 3) and recast the 98 MACs as a
    # banded (14*Wp, W) MXU matmul or pltpu.roll + column masks.
    acc0 = jnp.full((N, H, W), bias, jnp.float32)
    acc1 = jnp.zeros((N, H, W), jnp.float32)
    t = 0
    for ch in range(2):
        for ki in range(KH):
            slab = pad_ref[ch, :, ki:ki + H, :]                     # (N, H, Wp)
            for kj in range(KW):
                w = p_ref[ch * KH * KW + ki * KW + kj]
                term = w * slab[:, :, kj:kj + W]
                if t % 2 == 0:
                    acc0 = acc0 + term
                else:
                    acc1 = acc1 + term
                t += 1
    y = acc0 + acc1

    # BatchNorm2d(1): training-mode batch statistics (fresh nn.BatchNorm2d in the
    # PyTorch forward), biased variance, two-pass for accuracy.
    cnt = jnp.float32(N * H * W)
    mu = jnp.sum(y) / cnt
    d = y - mu
    var = jnp.sum(d * d) / cnt
    norm = d * lax.rsqrt(var + BN_EPS) * gamma + beta
    scale_ref[...] = jax.nn.sigmoid(norm).astype(scale_ref.dtype)


# ---------------------------------------------------------------------------
# Pass 3: gating x * scale, streamed over (N, C) blocks (both axes parallel).
# ---------------------------------------------------------------------------
def gate_kernel(x_ref, s_ref, o_ref):
    # x_ref: (nblk, cblk, HW) native dtype; s_ref: (nblk, 1, HW) scale dtype
    o_ref[...] = (x_ref[...].astype(s_ref.dtype) * s_ref[...]).astype(o_ref.dtype)


def _stream_blocks(n_dim, c_dim, lane, itemsize, target_bytes=2 << 20):
    """Pick (nblk, cblk) for the streamed (N, C, HW) passes.

    cblk must be the full C or a multiple of 8 that divides C ((8,128) rule on
    the second-minor block dim); nblk is any divisor of N.  Together they aim
    for ~target_bytes per grid step so the ~0.35us per-step overhead is
    amortized, while staying small enough for v7x's 64 MiB VMEM when
    double-buffered.
    """
    row_bytes = lane * itemsize
    if c_dim * row_bytes <= target_bytes:
        cblk = c_dim
    else:
        mult8 = [d for d in range(8, c_dim + 1, 8)
                 if c_dim % d == 0 and d * row_bytes <= target_bytes]
        cblk = max(mult8) if mult8 else c_dim     # fall back to full C (layout-legal)
    blk_bytes = cblk * row_bytes
    nblk = 1
    for d in range(1, n_dim + 1):
        if n_dim % d == 0 and d * blk_bytes <= target_bytes:
            nblk = d
    return nblk, cblk


def spatial_gate(x, conv_w, conv_b, gamma, beta, *, donate_x=False):
    N, C, H, W = x.shape
    HW = H * W
    x3 = x.reshape(N, C, HW)   # lane-dense layout for both streamed passes

    # Pack all scalar parameters into one SMEM table: 98 conv taps + bias + gamma + beta.
    params = jnp.concatenate([
        conv_w.reshape(-1).astype(jnp.float32),                     # (1,2,7,7) -> (98,)
        conv_b.reshape(-1).astype(jnp.float32),                     # (1,)
        jnp.stack([jnp.asarray(gamma, jnp.float32),
                   jnp.asarray(beta, jnp.float32)]),                # (2,)
    ])

    nblk, cblk = _stream_blocks(N, C, HW, x3.dtype.itemsize)
    stream_vmem = 32 << 20   # explicit scoped-VMEM budget for the streamed passes
    # TODO(synk): on v7x, when both N//nblk and C//cblk collapse to 1, tile HW
    # (multiples of 128) to keep a parallel grid axis of extent >= 2 for both TCs.

    # ---- pass 1: channel pooling, pipelined over (N, C) blocks --------------
    pmax, pmean = pl.pallas_call(
        functools.partial(pool_kernel, inv_c=1.0 / C),
        out_shape=(jax.ShapeDtypeStruct((N, 1, HW), jnp.float32),
                   jax.ShapeDtypeStruct((N, 1, HW), jnp.float32)),
        grid=(N // nblk, C // cblk),
        in_specs=[pl.BlockSpec((nblk, cblk, HW), lambda n, c: (n, c, 0))],
        out_specs=(pl.BlockSpec((nblk, 1, HW), lambda n, c: (n, 0, 0)),
                   pl.BlockSpec((nblk, 1, HW), lambda n, c: (n, 0, 0))),
        scratch_shapes=[pltpu.VMEM((nblk, 1, HW), jnp.float32),
                        pltpu.VMEM((nblk, 1, HW), jnp.float32)],
        compiler_params=pltpu.CompilerParams(
            dimension_semantics=("parallel", "arbitrary"),
            vmem_limit_bytes=stream_vmem),
    )(x3)

    # ---- pass 2: conv + BN + sigmoid on the tiny pooled maps ----------------
    scale_dtype = jnp.bfloat16 if x.dtype == jnp.bfloat16 else jnp.float32
    scale = pl.pallas_call(
        conv_bn_sigmoid_kernel,
        out_shape=jax.ShapeDtypeStruct((N, H, W), scale_dtype),
        in_specs=[
            pl.BlockSpec(memory_space=pltpu.MemorySpace.VMEM),
            pl.BlockSpec(memory_space=pltpu.MemorySpace.VMEM),
            pl.BlockSpec(memory_space=pltpu.MemorySpace.SMEM),
        ],
        out_specs=pl.BlockSpec(memory_space=pltpu.MemorySpace.VMEM),
        scratch_shapes=[pltpu.VMEM((2, N, H + 2 * PAD, W + 2 * PAD), jnp.float32)],
    )(pmax.reshape(N, H, W), pmean.reshape(N, H, W), params)

    # ---- pass 3: gating, pipelined over (N, C) blocks, both axes parallel ---
    out3 = pl.pallas_call(
        gate_kernel,
        out_shape=jax.ShapeDtypeStruct((N, C, HW), x.dtype),
        grid=(N // nblk, C // cblk),
        in_specs=[
            pl.BlockSpec((nblk, cblk, HW), lambda n, c: (n, c, 0)),
            pl.BlockSpec((nblk, 1, HW), lambda n, c: (n, 0, 0)),
        ],
        out_specs=pl.BlockSpec((nblk, cblk, HW), lambda n, c: (n, c, 0)),
        compiler_params=pltpu.CompilerParams(
            dimension_semantics=("parallel", "parallel"),
            vmem_limit_bytes=stream_vmem),
        input_output_aliases=({0: 0} if donate_x else {}),
    )(x3, scale.reshape(N, 1, HW))

    return out3.reshape(N, C, H, W)


def spatial_gate_ref(x, conv_w, conv_b, gamma, beta):
    """Pure-JAX reference matching the PyTorch forward (training-mode BN)."""
    xf = x.astype(jnp.float32)
    pooled = jnp.stack([jnp.max(xf, axis=1), jnp.mean(xf, axis=1)], axis=1)  # (N,2,H,W)
    y = lax.conv_general_dilated(
        pooled, conv_w.astype(jnp.float32), (1, 1),
        ((PAD, PAD), (PAD, PAD)), dimension_numbers=("NCHW", "OIHW", "NCHW"))
    y = y + conv_b.reshape(1, -1, 1, 1)
    mu = jnp.mean(y)
    var = jnp.mean((y - mu) ** 2)
    norm = (y - mu) * lax.rsqrt(var + BN_EPS) * gamma + beta
    return (xf * jax.nn.sigmoid(norm)).astype(x.dtype)


if __name__ == "__main__":
    key = jax.random.PRNGKey(0)
    kx, kw, kb = jax.random.split(key, 3)

    N, C, H, W = 2, 4, 16, 16
    x = jax.random.normal(kx, (N, C, H, W), jnp.float32)

    # Deterministic synthetic parameter init (shapes from SpatialGate.__init__):
    # Conv2d(2, 1, 7, padding=3): weight (1,2,7,7), bias (1,); BatchNorm2d(1): gamma, beta.
    conv_w = jax.random.normal(kw, (1, 2, KH, KW), jnp.float32) * (1.0 / np.sqrt(2 * KH * KW))
    conv_b = jax.random.normal(kb, (1,), jnp.float32) * 0.05
    gamma = jnp.float32(1.0)   # BatchNorm2d default init
    beta = jnp.float32(0.0)

    out = jax.block_until_ready(spatial_gate(x, conv_w, conv_b, gamma, beta))
    ref = spatial_gate_ref(x, conv_w, conv_b, gamma, beta)
    np.testing.assert_allclose(np.asarray(out), np.asarray(ref), rtol=2e-3, atol=1e-4)
    print("KERNEL_OK")
</pallas_src>

<mosaic_0001>
module attributes {stable_mosaic.version = 11 : i64} {
  func.func @pool_kernel(%arg0: i32, %arg1: i32, %arg2: memref<2x4x256xf32, #tpu.memory_space<vmem>>, %arg3: memref<2x1x256xf32, #tpu.memory_space<vmem>>, %arg4: memref<2x1x256xf32, #tpu.memory_space<vmem>>, %arg5: memref<2x1x256xf32, #tpu.memory_space<vmem>>, %arg6: memref<2x1x256xf32, #tpu.memory_space<vmem>>) attributes {dimension_semantics = [#tpu.dimension_semantics<parallel>, #tpu.dimension_semantics<arbitrary>], iteration_bounds = array<i64: 1, 1>, scalar_prefetch = 0 : i64, scratch_operands = 2 : i64, tpu.core_type = #tpu.core_type<tc>, window_params = [{transform_indices = @transform_0, window_bounds = array<i64: 2, 4, 256>}, {transform_indices = @transform_1, window_bounds = array<i64: 2, 1, 256>}, {transform_indices = @transform_2, window_bounds = array<i64: 2, 1, 256>}]} {
    %c0 = arith.constant 0 : index
    %c0_0 = arith.constant 0 : index
    %c0_1 = arith.constant 0 : index
    %0 = vector.load %arg2[%c0, %c0_0, %c0_1] : memref<2x4x256xf32, #tpu.memory_space<vmem>>, vector<2x4x256xf32>
    %cst = arith.constant dense<0xFF800000> : vector<2x256xf32>
    %1 = vector.multi_reduction <maximumf>, %0, %cst [1] : vector<2x4x256xf32> to vector<2x256xf32>
    %2 = vector.shape_cast %1 : vector<2x256xf32> to vector<2x1x256xf32>
    %cst_2 = arith.constant dense<0.000000e+00> : vector<2x256xf32>
    %3 = vector.multi_reduction <add>, %0, %cst_2 [1] : vector<2x4x256xf32> to vector<2x256xf32>
    %4 = vector.shape_cast %3 : vector<2x256xf32> to vector<2x1x256xf32>
    %c0_i32 = arith.constant 0 : i32
    %5 = arith.cmpi eq, %arg1, %c0_i32 : i32
    %6 = arith.extui %5 : i1 to i32
    %c0_i32_3 = arith.constant 0 : i32
    %7 = arith.cmpi ne, %6, %c0_i32_3 : i32
    scf.if %7 {
      %c0_8 = arith.constant 0 : index
      %c0_9 = arith.constant 0 : index
      %c0_10 = arith.constant 0 : index
      %14 = vector.load %arg5[%c0_8, %c0_9, %c0_10] : memref<2x1x256xf32, #tpu.memory_space<vmem>>, vector<2x1x256xf32>
      tpu.vector_store %arg5[%c0_8, %c0_9, %c0_10], %2 {strides = array<i32>} : memref<2x1x256xf32, #tpu.memory_space<vmem>>, vector<2x1x256xf32>,
      %c0_11 = arith.constant 0 : index
      %c0_12 = arith.constant 0 : index
      %c0_13 = arith.constant 0 : index
      %15 = vector.load %arg6[%c0_11, %c0_12, %c0_13] : memref<2x1x256xf32, #tpu.memory_space<vmem>>, vector<2x1x256xf32>
      tpu.vector_store %arg6[%c0_11, %c0_12, %c0_13], %4 {strides = array<i32>} : memref<2x1x256xf32, #tpu.memory_space<vmem>>, vector<2x1x256xf32>,
    } else {
    }
    %c0_i32_4 = arith.constant 0 : i32
    %8 = arith.cmpi sgt, %arg1, %c0_i32_4 : i32
    %9 = arith.extui %8 : i1 to i32
    %c0_i32_5 = arith.constant 0 : i32
    %10 = arith.cmpi ne, %9, %c0_i32_5 : i32
    scf.if %10 {
      %c0_8 = arith.constant 0 : index
      %c0_9 = arith.constant 0 : index
      %c0_10 = arith.constant 0 : index
      %14 = vector.load %arg5[%c0_8, %c0_9, %c0_10] : memref<2x1x256xf32, #tpu.memory_space<vmem>>, vector<2x1x256xf32>
      %15 = arith.maximumf %14, %2 : vector<2x1x256xf32>
      %c0_11 = arith.constant 0 : index
      %c0_12 = arith.constant 0 : index
      %c0_13 = arith.constant 0 : index
      %16 = vector.load %arg5[%c0_11, %c0_12, %c0_13] : memref<2x1x256xf32, #tpu.memory_space<vmem>>, vector<2x1x256xf32>
      tpu.vector_store %arg5[%c0_11, %c0_12, %c0_13], %15 {strides = array<i32>} : memref<2x1x256xf32, #tpu.memory_space<vmem>>, vector<2x1x256xf32>,
      %c0_14 = arith.constant 0 : index
      %c0_15 = arith.constant 0 : index
      %c0_16 = arith.constant 0 : index
      %17 = vector.load %arg6[%c0_14, %c0_15, %c0_16] : memref<2x1x256xf32, #tpu.memory_space<vmem>>, vector<2x1x256xf32>
      %18 = arith.addf %17, %4 : vector<2x1x256xf32>
      %c0_17 = arith.constant 0 : index
      %c0_18 = arith.constant 0 : index
      %c0_19 = arith.constant 0 : index
      %19 = vector.load %arg6[%c0_17, %c0_18, %c0_19] : memref<2x1x256xf32, #tpu.memory_space<vmem>>, vector<2x1x256xf32>
      tpu.vector_store %arg6[%c0_17, %c0_18, %c0_19], %18 {strides = array<i32>} : memref<2x1x256xf32, #tpu.memory_space<vmem>>, vector<2x1x256xf32>,
    } else {
    }
    %c0_i32_6 = arith.constant 0 : i32
    %11 = arith.cmpi eq, %arg1, %c0_i32_6 : i32
    %12 = arith.extui %11 : i1 to i32
    %c0_i32_7 = arith.constant 0 : i32
    %13 = arith.cmpi ne, %12, %c0_i32_7 : i32
    scf.if %13 {
      %c0_8 = arith.constant 0 : index
      %c0_9 = arith.constant 0 : index
      %c0_10 = arith.constant 0 : index
      %14 = vector.load %arg5[%c0_8, %c0_9, %c0_10] : memref<2x1x256xf32, #tpu.memory_space<vmem>>, vector<2x1x256xf32>
      %c0_11 = arith.constant 0 : index
      %c0_12 = arith.constant 0 : index
      %c0_13 = arith.constant 0 : index
      %15 = vector.load %arg3[%c0_11, %c0_12, %c0_13] : memref<2x1x256xf32, #tpu.memory_space<vmem>>, vector<2x1x256xf32>
      tpu.vector_store %arg3[%c0_11, %c0_12, %c0_13], %14 {strides = array<i32>} : memref<2x1x256xf32, #tpu.memory_space<vmem>>, vector<2x1x256xf32>,
      %c0_14 = arith.constant 0 : index
      %c0_15 = arith.constant 0 : index
      %c0_16 = arith.constant 0 : index
      %16 = vector.load %arg6[%c0_14, %c0_15, %c0_16] : memref<2x1x256xf32, #tpu.memory_space<vmem>>, vector<2x1x256xf32>
      %cst_17 = arith.constant 2.500000e-01 : f32
      %17 = vector.broadcast %cst_17 : f32 to vector<2x1x256xf32>
      %18 = arith.mulf %16, %17 : vector<2x1x256xf32>
      %c0_18 = arith.constant 0 : index
      %c0_19 = arith.constant 0 : index
      %c0_20 = arith.constant 0 : index
      %19 = vector.load %arg4[%c0_18, %c0_19, %c0_20] : memref<2x1x256xf32, #tpu.memory_space<vmem>>, vector<2x1x256xf32>
      tpu.vector_store %arg4[%c0_18, %c0_19, %c0_20], %18 {strides = array<i32>} : memref<2x1x256xf32, #tpu.memory_space<vmem>>, vector<2x1x256xf32>,
    } else {
    }
    return
  }
  func.func @transform_0(%arg0: i32, %arg1: i32) -> (i32, i32, i32) {
    %c0_i32 = arith.constant 0 : i32
    %c0_i32_0 = arith.constant 0 : i32
    return %arg0, %arg1, %c0_i32 : i32, i32, i32
  }
  func.func @transform_1(%arg0: i32, %arg1: i32) -> (i32, i32, i32) {
    %c0_i32 = arith.constant 0 : i32
    %c0_i32_0 = arith.constant 0 : i32
    %c0_i32_1 = arith.constant 0 : i32
    return %arg0, %c0_i32, %c0_i32_0 : i32, i32, i32
  }
  func.func @transform_2(%arg0: i32, %arg1: i32) -> (i32, i32, i32) {
    %c0_i32 = arith.constant 0 : i32
    %c0_i32_0 = arith.constant 0 : i32
    %c0_i32_1 = arith.constant 0 : i32
    return %arg0, %c0_i32, %c0_i32_0 : i32, i32, i32
  }
}

</mosaic_0001>

<bundles_post_ra>
// kernel: tpu_custom_call.1
= control target key start
LH: loop header
LB: loop body
LE: loop exit
PB: predicated region body
PF: predicated region fallthrough
CT: control target
= control target key end

     0   :  { %8 = vsyncpa [#allocation5], 0  ;;  %s387_s0 = inlined_call_operand.hbm [shape: f32[2,4,256], index: 0, kind: input, shape index: {}]   ;;  %s388_s1 = inlined_call_operand.hbm [shape: f32[2,1,256], index: 1, kind: output, shape index: {0}]   ;;  %s389_s2 = inlined_call_operand.hbm [shape: f32[2,1,256], index: 2, kind: output, shape index: {1}]  }
   0x1   :  { %9 = vsyncpa [#allocation6], 0 }
   0x2   :  { %10 = vsyncpa [#allocation9], 0  ;;  %s15_s11 = sshll.u32 %s387_s0, 4  ;;  %s324_s12 = smov [#allocation4]   ;;  %s16_s11 = int_to_ptr.hbm [resolvable:$true] %s15_s11 }
   0x3   :  { %s17_s13 = sshll.u32 %s324_s12, 4  ;;  %s325_s14 = smov 128   ;;  %s18_s13 = int_to_ptr.vmem [resolvable:$true] %s17_s13 }
   0x4   :  { %s326_s15 = smov 8  }
   0x5   :  { %23 = dma.hbm_to_vmem [thread:$0]  %s16_s11, 256, %s18_s13, [#allocation5], %s325_s14, %s325_s14, %s326_s15  }
   0x6   :  { %318 = dma.done.wait [#allocation5], 256  }
   0x7   :  { %319 = vsyncadd [#allocation5], 4294967040  ;;  %v28_v0 = vld [vmem:[#allocation4] sm:$0xff]  ;;  %v29_v1 = vld [vmem:[#allocation4 + $0x8] sm:$0xff]  ;;  %vm43_vm0 = vcmask 1043456   ;;  %v126_v23 = vlaneseq  ;;  %vm121_vm1 = vcmask 1040384  }
   0x8   :  { %32 = vst [vmem:[#allocation1] ss:$2 sm:$0xff] %v28_v0  ;;  %s327_s0 = smov [#allocation7]   ;;  %s208_s19 = sshll.u32 %s388_s1, 4  ;;  %s209_s19 = int_to_ptr.hbm [resolvable:$true] %s208_s19 }
   0x9   :  { %36 = vst [vmem:[#allocation1 + $0x10] ss:$2 sm:$0xff] %v29_v1  ;;  %vm355_vm2 = vcmp.lt.s32.totalorder %v126_v23, 256  ;;  %s206_s16 = sshll.u32 %s327_s0, 4  ;;  %s328_s1 = smov 32   ;;  %s207_s16 = int_to_ptr.vmem [resolvable:$true] %s206_s16 }
   0xa   :  { %s329_s20 = smov 2   ;;  %s330_s21 = smov [#allocation8]  }
   0xb   :  { %s219_s22 = sshll.u32 %s330_s21, 4  ;;  %s221_s25 = sshll.u32 %s389_s2, 4  ;;  %s220_s22 = int_to_ptr.vmem [resolvable:$true] %s219_s22  ;;  %s222_s25 = int_to_ptr.hbm [resolvable:$true] %s221_s25 }
   0xf   :  { %v33_v2 = vld.sshfl [vmem:[#allocation1] sm:$0xff pattern:$0x75316420]  ;;  %v34_v3 = vld.sshfl [vmem:[#allocation1 + $0x8] sm:$0xff pattern:$0x75316420] }
  0x10   :  { %v44_v4 = vsel %vm43_vm0, %v33_v2, -inf  ;;  %v51_v5 = vsel %vm43_vm0, %v34_v3, -inf  ;;  %72 = vst [vmem:[#allocation1] ss:$2 sm:$0xff] %v28_v0 }
  0x11   :  { %v45_v6 = vrot.slane %v44_v4, 4  ;;  %v52_v7 = vrot.slane %v51_v5, 4  ;;  %v37_v8 = vld.sshfl [vmem:[#allocation1 + $0x10] sm:$0xff pattern:$0x75316420] }
  0x12   :  { %v38_v9 = vld.sshfl [vmem:[#allocation1 + $0x18] sm:$0xff pattern:$0x75316420]  ;;  %v58_v10 = vsel %vm43_vm0, %v37_v8, -inf }
  0x13   :  { %v46_v11 = vmax.f32 %v44_v4, %v45_v6  ;;  %v53_v12 = vmax.f32 %v51_v5, %v52_v7  ;;  %v59_v13 = vrot.slane %v58_v10, 4  ;;  %v65_v14 = vsel %vm43_vm0, %v38_v9, -inf  ;;  %76 = vst [vmem:[#allocation1 + $0x10] ss:$2 sm:$0xff] %v29_v1 }
  0x14   :  { %v66_v15 = vrot.slane %v65_v14, 4 }
  0x15   :  { %v47_v16 = vrot.slane %v46_v11, 2  ;;  %v54_v17 = vrot.slane %v53_v12, 2  ;;  %v60_v18 = vmax.f32 %v58_v10, %v59_v13 }
  0x16   :  { %v67_v19 = vmax.f32 %v65_v14, %v66_v15 }
  0x17   :  { %v61_v20 = vrot.slane %v60_v18, 2  ;;  %v48_v21 = vmax.f32 %v46_v11, %v47_v16  ;;  %v55_v22 = vmax.f32 %v53_v12, %v54_v17  ;;  %v73_v24 = vld.sshfl [vmem:[#allocation1] sm:$0xff pattern:$0x75316420] }
  0x18   :  { %v68_v25 = vrot.slane %v67_v19, 2  ;;  %v74_v26 = vld.sshfl [vmem:[#allocation1 + $0x8] sm:$0xff pattern:$0x75316420]  ;;  %v83_v27 = vsel %vm43_vm0, %v73_v24, 0.0 }
  0x19   :  { %v49_v28 = vrot.slane %v48_v21, 1  ;;  %v56_v29 = vrot.slane %v55_v22, 1  ;;  %v62_v30 = vmax.f32 %v60_v18, %v61_v20  ;;  %v84_v31 = vrot.slane %v83_v27, 4 }
  0x1a   :  { %v69_v32 = vmax.f32 %v67_v19, %v68_v25  ;;  %v90_v33 = vsel %vm43_vm0, %v74_v26, 0.0  ;;  %v77_v34 = vld.sshfl [vmem:[#allocation1 + $0x10] sm:$0xff pattern:$0x75316420] }
  0x1b   :  { %v57_v35 = vmax.f32 %v55_v22, %v56_v29  ;;  %v63_v37 = vrot.slane %v62_v30, 1  ;;  %v85_v38 = vadd.f32 %v84_v31, %v83_v27  ;;  %v78_v39 = vld.sshfl [vmem:[#allocation1 + $0x18] sm:$0xff pattern:$0x75316420]  ;;  %v91_v41 = vrot.slane %v90_v33, 4 }
  0x1c   :  { %v70_v40 = vrot.slane %v69_v32, 1  ;;  %v97_v42 = vsel %vm43_vm0, %v77_v34, 0.0  ;;  %v104_v43 = vsel %vm43_vm0, %v78_v39, 0.0  ;;  %v50_v44 = vmax.f32 %v48_v21, %v49_v28 }
  0x1d   :  { %v119_v45 = vrot.slane %v57_v35, 7  ;;  %v86_v46 = vrot.slane %v85_v38, 2  ;;  %v98_v47 = vrot.slane %v97_v42, 4  ;;  %v92_v49 = vadd.f32 %v91_v41, %v90_v33 }
  0x1e   :  { %v71_v48 = vmax.f32 %v69_v32, %v70_v40  ;;  %v105_v50 = vrot.slane %v104_v43, 4  ;;  %v64_v52 = vmax.f32 %v62_v30, %v63_v37 }
  0x1f   :  { %v122_v51 = vsel %vm121_vm1, %v50_v44, %v119_v45  ;;  %v99_v53 = vadd.f32 %v98_v47, %v97_v42  ;;  %v87_v55 = vadd.f32 %v86_v46, %v85_v38  ;;  %v93_v56 = vrot.slane %v92_v49, 2 }
  0x20   :  { %130 = vst.msk [vmem:[#allocation2] sm:$0x3] %vm355_vm2, %v122_v51  ;;  %v120_v54 = vrot.slane %v71_v48, 7  ;;  %v106_v57 = vadd.f32 %v105_v50, %v104_v43 }
  0x21   :  { %v100_v58 = vrot.slane %v99_v53, 2  ;;  %v94_v60 = vadd.f32 %v93_v56, %v92_v49  ;;  %v88_v63 = vrot.slane %v87_v55, 1 }
  0x22   :  { %v123_v59 = vsel %vm121_vm1, %v64_v52, %v120_v54  ;;  %v107_v61 = vrot.slane %v106_v57, 2 }
  0x23   :  { %131 = vst.msk [vmem:[#allocation2 + $0x2] sm:$0x3] %vm355_vm2, %v123_v59  ;;  %v101_v62 = vadd.f32 %v100_v58, %v99_v53  ;;  %v95_v0 = vrot.slane %v94_v60, 1  ;;  %v89_v6 = vadd.f32 %v88_v63, %v87_v55 }
  0x24   :  { %v108_v1 = vadd.f32 %v107_v61, %v106_v57 }
  0x25   :  { %v96_v2 = vadd.f32 %v95_v0, %v94_v60  ;;  %v102_v3 = vrot.slane %v101_v62, 1 }
  0x26   :  { %v109_v4 = vrot.slane %v108_v1, 1 }
  0x27   :  { %v188_v5 = vld [vmem:[#allocation2] sm:$0x3]  ;;  %v136_v7 = vrot.slane %v96_v2, 7  ;;  %v103_v10 = vadd.f32 %v102_v3, %v101_v62 }
  0x28   :  { %v110_v8 = vadd.f32 %v109_v4, %v108_v1  ;;  %194 = vst.msk [vmem:[#allocation7] sm:$0x3] %vm355_vm2, %v188_v5 }
  0x29   :  { %v138_v9 = vsel %vm121_vm1, %v89_v6, %v136_v7 }
  0x2a   :  { %v137_v11 = vrot.slane %v110_v8, 7  ;;  %v189_v12 = vld [vmem:[#allocation2 + $0x2] sm:$0x3]  ;;  %142 = vst.msk [vmem:[#allocation3] sm:$0x3] %vm355_vm2, %v138_v9 }
  0x2b   :  { %195 = vst.msk [vmem:[#allocation7 + $0x2] sm:$0x3] %vm355_vm2, %v189_v12 }
  0x2c   :  { %v139_v13 = vsel %vm121_vm1, %v103_v10, %v137_v11  ;;  %214 = dma.vmem_to_hbm [thread:$0]  %s207_s16, 64, %s209_s19, [#allocation6], %s328_s1, %s328_s1, %s329_s20  }
  0x2d   :  { %143 = vst.msk [vmem:[#allocation3 + $0x2] sm:$0x3] %vm355_vm2, %v139_v13 }
  0x31   :  { %v196_v14 = vld [vmem:[#allocation3] sm:$0x3] }
  0x32   :  { %v198_v15 = vmul.f32 0.25, %v196_v14 }
  0x34   :  { %v197_v16 = vld [vmem:[#allocation3 + $0x2] sm:$0x3]  ;;  %200 = vst.msk [vmem:[#allocation8] sm:$0x3] %vm355_vm2, %v198_v15 }
  0x35   :  { %v199_v17 = vmul.f32 0.25, %v197_v16 }
  0x37   :  { %201 = vst.msk [vmem:[#allocation8 + $0x2] sm:$0x3] %vm355_vm2, %v199_v17 }
  0x38   :  { %227 = dma.vmem_to_hbm [thread:$0]  %s220_s22, 64, %s222_s25, [#allocation9], %s328_s1, %s328_s1, %s329_s20  }
  0x39   :  { %320 = dma.done.wait [#allocation6], 64  }
  0x3a   :  { %321 = vsyncadd [#allocation6], 4294967232 }
  0x3b   :  { %322 = dma.done.wait [#allocation9], 64  }
  0x3c   :  { %323 = vsyncadd [#allocation9], 4294967232 }
  0x3d   :  { %236 = vsyncpa [#allocation5], 1 }
  0x3e   :  { %237 = vsyncpa [#allocation6], 1 }
  0x3f   :  { %238 = vsyncpa [#allocation9], 1 }

</bundles_post_ra>
